<compile_context>
chip_gen: v7x
topology: tpu7x:2x2x1
jax: 0.10.0
libtpu: 0.0.40
codegen_flags: <defaults>
</compile_context>

<pallas_src>
from functools import partial

import jax
import jax.numpy as jnp
import numpy as np
from jax.experimental import pallas as pl
from jax.experimental.pallas import tpu as pltpu

_LANE = 128      # last-dim tiling quantum (vreg lanes)
_SUBLANE = 8     # second-to-last-dim tiling quantum (f32 sublanes)
_MAX_TILE_N = 2048


def _round_up(n, m):
    return ((n + m - 1) // m) * m


def _pad_axis(a, target, axis):
    pad = target - a.shape[axis]
    if pad <= 0:
        return a
    widths = [(0, 0)] * a.ndim
    widths[axis] = (0, pad)
    return jnp.pad(a, widths)


def _probe_single_buffer():
    """Import-time check that BlockSpec accepts pipeline_mode=pl.Buffered(1)."""
    try:
        pl.BlockSpec((_SUBLANE, _LANE), lambda i: (0, 0), pipeline_mode=pl.Buffered(1))
        return True
    except Exception:
        return False


_SINGLE_BUFFER_WEIGHTS = _probe_single_buffer()


def _tpu_vmem_bytes():
    """Physical per-core VMEM; conservative 64 MiB fallback if the query fails."""
    try:
        return int(pltpu.get_tpu_info().vmem_capacity_bytes)
    except Exception:
        return 64 * 1024 * 1024


# --------------------------------------------------------------------------------------
# Kernel
# --------------------------------------------------------------------------------------
def _indicator_encoder_kernel(x_ref, w1_ref, b1_ref, wd_ref, bd_ref, wu_ref, bu_ref, o_ref):
    # x read as f32 from HBM; cast to the MXU operand dtype on the VPU (free slot).
    x = x_ref[...].astype(w1_ref.dtype)                               # (tile_n, in_dim)
    # linear: input_dim -> output_dim  (MXU, f32 accumulation)
    emb = jnp.dot(x, w1_ref[...],
                  preferred_element_type=jnp.float32) + b1_ref[...]   # f32 (tile_n, out_p)
    # down_ffn + relu: output_dim -> output_dim // 2
    h = jnp.dot(emb.astype(wd_ref.dtype), wd_ref[...],
                preferred_element_type=jnp.float32) + bd_ref[...]
    h = jnp.maximum(h, 0.0)
    # up_ffn: output_dim // 2 -> output_dim
    up = jnp.dot(h.astype(wu_ref.dtype), wu_ref[...],
                 preferred_element_type=jnp.float32) + bu_ref[...]
    # SourceAdaptor residual in f32; cast only at the store.
    o_ref[...] = (emb + up).astype(o_ref.dtype)


# --------------------------------------------------------------------------------------
# Jitted forward (pallas_call + epilogue slice fused under one jit)
# --------------------------------------------------------------------------------------
@partial(jax.jit, static_argnames=("tile_n", "output_dim", "out_dtype",
                                   "single_buffer", "vmem_limit"))
def _forward(x, w_lin, b_lin, w_down, b_down, w_up, b_up, *,
             tile_n, output_dim, out_dtype, single_buffer, vmem_limit):
    N, in_dim = x.shape
    out_p = w_lin.shape[1]
    hid_p = w_down.shape[1]
    odt = jnp.dtype(out_dtype)

    const_kwargs = dict(pipeline_mode=pl.Buffered(1)) if single_buffer else {}

    def const_spec(shape):
        # Constant blocks: index_map never changes -> resident, no re-DMA across grid steps.
        return pl.BlockSpec(shape, lambda i: (0, 0), **const_kwargs)

    grid = (pl.cdiv(N, tile_n),)
    out_full = pl.pallas_call(
        _indicator_encoder_kernel,
        out_shape=jax.ShapeDtypeStruct((N, out_p), odt),
        grid_spec=pltpu.PrefetchScalarGridSpec(
            num_scalar_prefetch=0,
            grid=grid,
            in_specs=[
                pl.BlockSpec((tile_n, in_dim), lambda i: (i, 0)),   # x tile (pipelined)
                const_spec((in_dim, out_p)),                        # W_lin
                const_spec((1, out_p)),                             # b_lin
                const_spec((out_p, hid_p)),                         # W_down
                const_spec((1, hid_p)),                             # b_down
                const_spec((hid_p, out_p)),                         # W_up
                const_spec((1, out_p)),                             # b_up
            ],
            out_specs=pl.BlockSpec((tile_n, out_p), lambda i: (i, 0)),
        ),
        compiler_params=pltpu.CompilerParams(
            dimension_semantics=("parallel",),     # batch-tile axis: shards across TCs on v7x
            vmem_limit_bytes=int(vmem_limit),
        ),
    )(x, w_lin, b_lin, w_down, b_down, w_up, b_up)

    return out_full[:, :output_dim]


# --------------------------------------------------------------------------------------
# One-time parameter preparation (pad + cast, hoisted out of the per-call path)
# --------------------------------------------------------------------------------------
def prepare_params(params, *, mm_dtype=jnp.bfloat16):
    """Pad feature dims to lane multiples and cast weights to the MXU dtype, once."""
    input_dim, output_dim = params["w_lin"].shape
    hidden_dim = params["w_down"].shape[1]
    out_p = _round_up(output_dim, _LANE)
    hid_p = _round_up(hidden_dim, _LANE)

    prepped = {
        # K dim of W_lin (= input_dim) intentionally NOT padded (full-dim block is legal).
        "w_lin":  _pad_axis(params["w_lin"], out_p, 1).astype(mm_dtype),
        "b_lin":  _pad_axis(params["b_lin"].reshape(1, -1), out_p, 1).astype(jnp.float32),
        "w_down": _pad_axis(_pad_axis(params["w_down"], out_p, 0), hid_p, 1).astype(mm_dtype),
        "b_down": _pad_axis(params["b_down"].reshape(1, -1), hid_p, 1).astype(jnp.float32),
        "w_up":   _pad_axis(_pad_axis(params["w_up"], hid_p, 0), out_p, 1).astype(mm_dtype),
        "b_up":   _pad_axis(params["b_up"].reshape(1, -1), out_p, 1).astype(jnp.float32),
    }
    meta = dict(input_dim=input_dim, output_dim=output_dim, hidden_dim=hidden_dim,
                out_p=out_p, hid_p=hid_p,
                mm_bytes=jnp.dtype(mm_dtype).itemsize)
    return prepped, meta


def _pick_tiling(N, meta, out_dtype, single_buffer):
    """Generation-aware tile_n + vmem_limit selection."""
    in_dim, out_p, hid_p = meta["input_dim"], meta["out_p"], meta["hid_p"]
    mm_bytes = meta["mm_bytes"]
    out_bytes = jnp.dtype(out_dtype).itemsize

    vmem_phys = _tpu_vmem_bytes()
    two_cores = vmem_phys <= 64 * 1024 * 1024        # heuristic: 64 MiB/TC parts have 2 TCs

    weight_buf = 1 if single_buffer else 2
    weight_bytes = weight_buf * (
        (in_dim * out_p + out_p * hid_p + hid_p * out_p) * mm_bytes
        + (2 * out_p + hid_p) * 4)

    # Per-row VMEM: double-buffered x (f32) + double-buffered out tile
    # + simultaneously-live f32 intermediates (emb, h, up) + their bf16 MXU-operand casts.
    row_bytes = (2 * in_dim * 4
                 + 2 * out_p * out_bytes
                 + (2 * out_p + hid_p) * 4
                 + (out_p + hid_p) * mm_bytes)

    budget = int(0.80 * vmem_phys) - weight_bytes
    tile_n = max(_SUBLANE, min(_MAX_TILE_N, (budget // row_bytes) // _SUBLANE * _SUBLANE))

    if two_cores and N > tile_n:
        # Keep >= 2 grid steps so the "parallel" batch axis shards across both v7x TCs.
        tile_n = min(tile_n, max(_SUBLANE, _round_up(-(-N // 2), _SUBLANE)))
    tile_n = min(tile_n, _round_up(N, _SUBLANE))

    vmem_est = weight_bytes + tile_n * row_bytes
    vmem_limit = min(max(int(1.25 * vmem_est), 32 * 1024 * 1024),
                     int(0.85 * vmem_phys))
    return int(tile_n), int(vmem_limit)


def indicator_encoder(x, prepped, meta, *, tile_n=None, out_dtype=None):
    """x: [N, input_dim] float32. prepped/meta: output of prepare_params (cached by caller)."""
    N, in_dim = x.shape
    assert in_dim == meta["input_dim"]
    odt = jnp.dtype(x.dtype if out_dtype is None else out_dtype)

    auto_tile, vmem_limit = _pick_tiling(N, meta, odt, _SINGLE_BUFFER_WEIGHTS)
    if tile_n is None:
        tile_n = auto_tile
    else:
        tile_n = max(_SUBLANE, _round_up(min(int(tile_n), _round_up(N, _SUBLANE)), _SUBLANE))

    return _forward(
        x, prepped["w_lin"], prepped["b_lin"], prepped["w_down"], prepped["b_down"],
        prepped["w_up"], prepped["b_up"],
        tile_n=tile_n, output_dim=meta["output_dim"], out_dtype=str(odt),
        single_buffer=_SINGLE_BUFFER_WEIGHTS, vmem_limit=vmem_limit)


# --------------------------------------------------------------------------------------
# Synthetic params + pure-JAX reference
# --------------------------------------------------------------------------------------
def init_params(key, input_dim, output_dim):
    """Deterministic synthetic params; weights stored pre-transposed as [in, out]."""
    hidden_dim = output_dim // 2
    k = jax.random.split(key, 6)

    def uniform(kk, shape, fan_in):
        bound = 1.0 / np.sqrt(fan_in)
        return jax.random.uniform(kk, shape, jnp.float32, -bound, bound)

    return {
        "w_lin":  uniform(k[0], (input_dim, output_dim), input_dim),
        "b_lin":  uniform(k[1], (output_dim,), input_dim),
        "w_down": uniform(k[2], (output_dim, hidden_dim), output_dim),
        "b_down": uniform(k[3], (hidden_dim,), output_dim),
        "w_up":   uniform(k[4], (hidden_dim, output_dim), hidden_dim),
        "b_up":   uniform(k[5], (output_dim,), hidden_dim),
    }


def reference(x, p, *, use_bf16=True):
    """Pure-JAX reference. use_bf16=True mirrors the kernel's MXU operand dtype."""
    mm = jnp.bfloat16 if use_bf16 else jnp.float32

    def dot(a, b):
        return jnp.dot(a.astype(mm), b.astype(mm), preferred_element_type=jnp.float32)

    emb = dot(x, p["w_lin"]) + p["b_lin"]
    h = jnp.maximum(dot(emb, p["w_down"]) + p["b_down"], 0.0)
    up = dot(h, p["w_up"]) + p["b_up"]
    return emb + up


if __name__ == "__main__":
    key = jax.random.PRNGKey(0)
    k_x, k_p = jax.random.split(key)

    batch = 300        # not a multiple of 8 or tile_n -> exercises the ragged last tile
    input_dim = 32     # intentionally not lane-aligned (kept unpadded as the K dim)
    output_dim = 64    # must be even (SourceAdaptor bottleneck = output_dim // 2)

    x = jax.random.normal(k_x, (batch, input_dim), dtype=jnp.float32)
    params = init_params(k_p, input_dim, output_dim)

    prepped, meta = prepare_params(params)            # one-time pad + bf16 cast
    out = indicator_encoder(x, prepped, meta)         # auto tile_n / VMEM limit
    out = jax.block_until_ready(out)
    assert out.shape == (batch, output_dim)
    assert out.dtype == x.dtype

    # Check against a reference that uses the same bf16 MXU operand dtype.
    ref_matched = reference(x, params, use_bf16=True)
    np.testing.assert_allclose(np.asarray(out), np.asarray(ref_matched),
                               rtol=2e-3, atol=2e-3)

    # Sanity check against pure-f32 math (looser: bf16 operand rounding is intentional).
    ref_f32 = reference(x, params, use_bf16=False)
    max_diff = float(np.max(np.abs(np.asarray(out) - np.asarray(ref_f32))))
    assert max_diff < 0.1, f"bf16-vs-f32 max diff too large: {max_diff}"

    print("KERNEL_OK")
</pallas_src>

<mosaic_0001>
module attributes {stable_mosaic.version = 11 : i64} {
  func.func @_indicator_encoder_kernel(%arg0: i32, %arg1: memref<304x32xf32, #tpu.memory_space<vmem>>, %arg2: memref<32x128xbf16, #tpu.memory_space<vmem>>, %arg3: memref<1x128xf32, #tpu.memory_space<vmem>>, %arg4: memref<128x128xbf16, #tpu.memory_space<vmem>>, %arg5: memref<1x128xf32, #tpu.memory_space<vmem>>, %arg6: memref<128x128xbf16, #tpu.memory_space<vmem>>, %arg7: memref<1x128xf32, #tpu.memory_space<vmem>>, %arg8: memref<304x128xf32, #tpu.memory_space<vmem>>) attributes {dimension_semantics = [#tpu.dimension_semantics<parallel>], iteration_bounds = array<i64: 1>, scalar_prefetch = 0 : i64, scratch_operands = 0 : i64, tpu.core_type = #tpu.core_type<tc>, window_params = [{transform_indices = @transform_0, window_bounds = array<i64: 304, 32>}, {pipeline_mode = #tpu.pipeline_mode<synchronous>, transform_indices = @transform_1, window_bounds = array<i64: 32, 128>}, {pipeline_mode = #tpu.pipeline_mode<synchronous>, transform_indices = @transform_2, window_bounds = array<i64: 1, 128>}, {pipeline_mode = #tpu.pipeline_mode<synchronous>, transform_indices = @transform_3, window_bounds = array<i64: 128, 128>}, {pipeline_mode = #tpu.pipeline_mode<synchronous>, transform_indices = @transform_4, window_bounds = array<i64: 1, 128>}, {pipeline_mode = #tpu.pipeline_mode<synchronous>, transform_indices = @transform_5, window_bounds = array<i64: 128, 128>}, {pipeline_mode = #tpu.pipeline_mode<synchronous>, transform_indices = @transform_6, window_bounds = array<i64: 1, 128>}, {transform_indices = @transform_7, window_bounds = array<i64: 304, 128>}]} {
    %c0 = arith.constant 0 : index
    %c0_0 = arith.constant 0 : index
    %0 = vector.load %arg1[%c0, %c0_0] : memref<304x32xf32, #tpu.memory_space<vmem>>, vector<304x32xf32>
    %1 = arith.truncf %0 : vector<304x32xf32> to vector<304x32xbf16>
    %c0_1 = arith.constant 0 : index
    %c0_2 = arith.constant 0 : index
    %2 = vector.load %arg2[%c0_1, %c0_2] : memref<32x128xbf16, #tpu.memory_space<vmem>>, vector<32x128xbf16>
    %cst = arith.constant dense<0.000000e+00> : vector<304x128xf32>
    %3 = tpu.matmul %1, %2, %cst {dimension_numbers = #tpu.dot_dimension_numbers<[1], [0], [0], [1], [0, 0, 1, 1], [], []>} : vector<304x32xbf16>, vector<32x128xbf16>, vector<304x128xf32> -> vector<304x128xf32>
    %c0_3 = arith.constant 0 : index
    %c0_4 = arith.constant 0 : index
    %4 = vector.load %arg3[%c0_3, %c0_4] : memref<1x128xf32, #tpu.memory_space<vmem>>, vector<1x128xf32>
    %5 = vector.broadcast %4 : vector<1x128xf32> to vector<304x128xf32>
    %6 = arith.addf %3, %5 : vector<304x128xf32>
    %7 = arith.truncf %6 : vector<304x128xf32> to vector<304x128xbf16>
    %c0_5 = arith.constant 0 : index
    %c0_6 = arith.constant 0 : index
    %8 = vector.load %arg4[%c0_5, %c0_6] : memref<128x128xbf16, #tpu.memory_space<vmem>>, vector<128x128xbf16>
    %cst_7 = arith.constant dense<0.000000e+00> : vector<304x128xf32>
    %9 = tpu.matmul %7, %8, %cst_7 {dimension_numbers = #tpu.dot_dimension_numbers<[1], [0], [0], [1], [0, 0, 1, 1], [], []>} : vector<304x128xbf16>, vector<128x128xbf16>, vector<304x128xf32> -> vector<304x128xf32>
    %c0_8 = arith.constant 0 : index
    %c0_9 = arith.constant 0 : index
    %10 = vector.load %arg5[%c0_8, %c0_9] : memref<1x128xf32, #tpu.memory_space<vmem>>, vector<1x128xf32>
    %11 = vector.broadcast %10 : vector<1x128xf32> to vector<304x128xf32>
    %12 = arith.addf %9, %11 : vector<304x128xf32>
    %cst_10 = arith.constant 0.000000e+00 : f32
    %13 = vector.broadcast %cst_10 : f32 to vector<304x128xf32>
    %14 = arith.maximumf %12, %13 : vector<304x128xf32>
    %15 = arith.truncf %14 : vector<304x128xf32> to vector<304x128xbf16>
    %c0_11 = arith.constant 0 : index
    %c0_12 = arith.constant 0 : index
    %16 = vector.load %arg6[%c0_11, %c0_12] : memref<128x128xbf16, #tpu.memory_space<vmem>>, vector<128x128xbf16>
    %cst_13 = arith.constant dense<0.000000e+00> : vector<304x128xf32>
    %17 = tpu.matmul %15, %16, %cst_13 {dimension_numbers = #tpu.dot_dimension_numbers<[1], [0], [0], [1], [0, 0, 1, 1], [], []>} : vector<304x128xbf16>, vector<128x128xbf16>, vector<304x128xf32> -> vector<304x128xf32>
    %c0_14 = arith.constant 0 : index
    %c0_15 = arith.constant 0 : index
    %18 = vector.load %arg7[%c0_14, %c0_15] : memref<1x128xf32, #tpu.memory_space<vmem>>, vector<1x128xf32>
    %19 = vector.broadcast %18 : vector<1x128xf32> to vector<304x128xf32>
    %20 = arith.addf %17, %19 : vector<304x128xf32>
    %21 = arith.addf %6, %20 : vector<304x128xf32>
    %c0_16 = arith.constant 0 : index
    %c0_17 = arith.constant 0 : index
    %22 = vector.load %arg8[%c0_16, %c0_17] : memref<304x128xf32, #tpu.memory_space<vmem>>, vector<304x128xf32>
    tpu.vector_store %arg8[%c0_16, %c0_17], %21 {strides = array<i32>} : memref<304x128xf32, #tpu.memory_space<vmem>>, vector<304x128xf32>,
    return
  }
  func.func @transform_0(%arg0: i32) -> (i32, i32) {
    %c0_i32 = arith.constant 0 : i32
    %c0_i32_0 = arith.constant 0 : i32
    return %arg0, %c0_i32 : i32, i32
  }
  func.func @transform_1(%arg0: i32) -> (i32, i32) {
    %c0_i32 = arith.constant 0 : i32
    %c0_i32_0 = arith.constant 0 : i32
    %c0_i32_1 = arith.constant 0 : i32
    return %c0_i32, %c0_i32_0 : i32, i32
  }
  func.func @transform_2(%arg0: i32) -> (i32, i32) {
    %c0_i32 = arith.constant 0 : i32
    %c0_i32_0 = arith.constant 0 : i32
    %c0_i32_1 = arith.constant 0 : i32
    return %c0_i32, %c0_i32_0 : i32, i32
  }
  func.func @transform_3(%arg0: i32) -> (i32, i32) {
    %c0_i32 = arith.constant 0 : i32
    %c0_i32_0 = arith.constant 0 : i32
    %c0_i32_1 = arith.constant 0 : i32
    return %c0_i32, %c0_i32_0 : i32, i32
  }
  func.func @transform_4(%arg0: i32) -> (i32, i32) {
    %c0_i32 = arith.constant 0 : i32
    %c0_i32_0 = arith.constant 0 : i32
    %c0_i32_1 = arith.constant 0 : i32
    return %c0_i32, %c0_i32_0 : i32, i32
  }
  func.func @transform_5(%arg0: i32) -> (i32, i32) {
    %c0_i32 = arith.constant 0 : i32
    %c0_i32_0 = arith.constant 0 : i32
    %c0_i32_1 = arith.constant 0 : i32
    return %c0_i32, %c0_i32_0 : i32, i32
  }
  func.func @transform_6(%arg0: i32) -> (i32, i32) {
    %c0_i32 = arith.constant 0 : i32
    %c0_i32_0 = arith.constant 0 : i32
    %c0_i32_1 = arith.constant 0 : i32
    return %c0_i32, %c0_i32_0 : i32, i32
  }
  func.func @transform_7(%arg0: i32) -> (i32, i32) {
    %c0_i32 = arith.constant 0 : i32
    %c0_i32_0 = arith.constant 0 : i32
    return %arg0, %c0_i32 : i32, i32
  }
}

</mosaic_0001>

<bundles_post_ra>
// kernel: _forward.1
= control target key start
LH: loop header
LB: loop body
LE: loop exit
PB: predicated region body
PF: predicated region fallthrough
CT: control target
= control target key end

     0   :  { %v1421_v0 = vmov 0.0   ;;  %vm1422_vm0 = vmmov 0   ;;  %vm107_vm1 = vcmask 261120   ;;  %s2224_s1 = inlined_call_operand.vmem [shape: bf16[32,128], index: 1, kind: input, shape index: {}]   ;;  %s2225_s0 = inlined_call_operand.vmem [shape: f32[300,32], index: 0, kind: input, shape index: {}]   ;;  %s2226_s3 = inlined_call_operand.vmem [shape: bf16[128,128], index: 3, kind: input, shape index: {}]   ;;  %s2227_s2 = inlined_call_operand.vmem [shape: f32[1,128], index: 2, kind: input, shape index: {}]   ;;  %s2228_s5 = inlined_call_operand.vmem [shape: bf16[128,128], index: 5, kind: input, shape index: {}]   ;;  %s2229_s4 = inlined_call_operand.vmem [shape: f32[1,128], index: 4, kind: input, shape index: {}]   ;;  %s2230_s6 = inlined_call_operand.vmem [shape: f32[1,128], index: 6, kind: input, shape index: {}]   ;;  %s2231_s7 = inlined_call_operand.vmem [shape: f32[300,128], index: 7, kind: output, shape index: {}]  }
   0x1   :  { %1133 = vmatprep.subr.bf16.mxu0 %v1421_v0  ;;  %v1403_v1 = vld [vmem:[%s2224_s1] sm:$0xff]   ;;  %1137 = vmatprep.mubr.msk.bf16.mxu0 %vm1422_vm0, %v1421_v0  ;;  %v1404_v2 = vld [vmem:[%s2224_s1 + $0x8] sm:$0xff]   ;;  %v29_v8 = vld [vmem:[%s2225_s0 + $0x10] sm:$0xff] }
   0x2   :  { %1397 = vmatprep.subr.bf16.mxu1 %v1421_v0  ;;  %1177 = vmatprep.mubr.msk.bf16.mxu1 %vm1422_vm0, %v1421_v0  ;;  %v27_v3 = vld [vmem:[%s2225_s0] sm:$0xff]  ;;  %v28_v4 = vld [vmem:[%s2225_s0 + $0x8] sm:$0xff]  ;;  %v30_v9 = vld [vmem:[%s2225_s0 + $0x18] sm:$0xff] }
   0x3   :  { %1134 = vmatpush3.bf16.msra.mxu0 %v1403_v1  ;;  %1399 = vmatpush3.bf16.msra.mxu1 %v1403_v1  ;;  %v65_v5 = vpack.c.bf16 %v28_v4, %v27_v3  ;;  %v47_v6 = vld [vmem:[%s2225_s0 + $0xa0] sm:$0xff]  ;;  %v48_v7 = vld [vmem:[%s2225_s0 + $0xa8] sm:$0xff]  ;;  %v66_v11 = vpack.c.bf16 %v30_v9, %v29_v8  ;;  %v49_v12 = vld [vmem:[%s2225_s0 + $0xb0] sm:$0xff] }
   0x4   :  { %1135 = vmatprep.subr.bf16.mxu0 %v1421_v0  ;;  %1398 = vmatprep.subr.bf16.mxu1 %v1421_v0  ;;  %v75_v10 = vpack.c.bf16 %v48_v7, %v47_v6  ;;  %v50_v13 = vld [vmem:[%s2225_s0 + $0xb8] sm:$0xff]  ;;  %v1405_v14 = vld [vmem:[%s2226_s3] sm:$0xff]   ;;  %v1406_v17 = vld [vmem:[%s2226_s3 + $0x8] sm:$0xff]  }
   0x5   :  { %v31_v15 = vld [vmem:[%s2225_s0 + $0x20] sm:$0xff]  ;;  %v76_v16 = vpack.c.bf16 %v50_v13, %v49_v12  ;;  %v32_v18 = vld [vmem:[%s2225_s0 + $0x28] sm:$0xff]  ;;  %v1407_v22 = vld [vmem:[%s2226_s3 + $0x10] sm:$0xff]  }
   0x6   :  { %v51_v19 = vld [vmem:[%s2225_s0 + $0xc0] sm:$0xff]  ;;  %v52_v20 = vld [vmem:[%s2225_s0 + $0xc8] sm:$0xff]  ;;  %v67_v21 = vpack.c.bf16 %v32_v18, %v31_v15  ;;  %v1408_v24 = vld [vmem:[%s2226_s3 + $0x18] sm:$0xff]  }
   0x7   :  { %1136 = vmatpush3.bf16.msra.mxu0 %v1404_v2  ;;  %1400 = vmatpush3.bf16.msra.mxu1 %v1404_v2  ;;  %v77_v23 = vpack.c.bf16 %v52_v20, %v51_v19  ;;  %v33_v25 = vld [vmem:[%s2225_s0 + $0x30] sm:$0xff]  ;;  %v34_v26 = vld [vmem:[%s2225_s0 + $0x38] sm:$0xff]  ;;  %v1409_v30 = vld [vmem:[%s2226_s3 + $0x20] sm:$0xff]  }
   0x8   :  { %1213 = vmatprep.subr.bf16.mxu1 %v1421_v0  ;;  %1305 = vmatprep.subr.bf16.mxu0 %v1421_v0  ;;  %v68_v27 = vpack.c.bf16 %v34_v26, %v33_v25  ;;  %v53_v28 = vld [vmem:[%s2225_s0 + $0xd0] sm:$0xff]  ;;  %v54_v29 = vld [vmem:[%s2225_s0 + $0xd8] sm:$0xff]  ;;  %v1410_v32 = vld [vmem:[%s2226_s3 + $0x28] sm:$0xff]  }
   0x9   :  { %v78_v31 = vpack.c.bf16 %v54_v29, %v53_v28  ;;  %v35_v33 = vld [vmem:[%s2225_s0 + $0x40] sm:$0xff]  ;;  %v36_v34 = vld [vmem:[%s2225_s0 + $0x48] sm:$0xff]  ;;  %v1411_v38 = vld [vmem:[%s2226_s3 + $0x30] sm:$0xff]  }
   0xa   :  { %1138 = vmatmul.mubr.msk.bf16.vlgmr.msra.gmra.mrb[0].mxu0 %vm107_vm1, %v65_v5  ;;  %1178 = vmatmul.mubr.msk.bf16.vlgmr.msra.gmra.mrb[0].mxu1 %vm107_vm1, %v75_v10  ;;  %v69_v35 = vpack.c.bf16 %v36_v34, %v35_v33  ;;  %v55_v36 = vld [vmem:[%s2225_s0 + $0xe0] sm:$0xff]  ;;  %v56_v37 = vld [vmem:[%s2225_s0 + $0xe8] sm:$0xff]  ;;  %v1412_v40 = vld [vmem:[%s2226_s3 + $0x38] sm:$0xff]  }
   0xb   :  { %1141 = vmatprep.mubr.msk.bf16.mxu0 %vm1422_vm0, %v1421_v0  ;;  %1181 = vmatprep.mubr.msk.bf16.mxu1 %vm1422_vm0, %v1421_v0  ;;  %v79_v39 = vpack.c.bf16 %v56_v37, %v55_v36  ;;  %v37_v41 = vld [vmem:[%s2225_s0 + $0x50] sm:$0xff]  ;;  %v38_v42 = vld [vmem:[%s2225_s0 + $0x58] sm:$0xff]  ;;  %v39_v47 = vld [vmem:[%s2225_s0 + $0x60] sm:$0xff] }
   0xc   :  { %1214 = vmatpush3.bf16.msra.mxu1 %v1405_v14  ;;  %v70_v43 = vpack.c.bf16 %v38_v42, %v37_v41  ;;  %v57_v44 = vld [vmem:[%s2225_s0 + $0xf0] sm:$0xff]  ;;  %v58_v45 = vld [vmem:[%s2225_s0 + $0xf8] sm:$0xff]  ;;  %v40_v48 = vld [vmem:[%s2225_s0 + $0x68] sm:$0xff] }
   0xd   :  { %1215 = vmatprep.subr.bf16.mxu1 %v1421_v0  ;;  %v80_v46 = vpack.c.bf16 %v58_v45, %v57_v44  ;;  %v71_v49 = vpack.c.bf16 %v40_v48, %v39_v47  ;;  %v59_v50 = vld [vmem:[%s2225_s0 + $0x100] sm:$0xff]  ;;  %v60_v51 = vld [vmem:[%s2225_s0 + $0x108] sm:$0xff]  ;;  %v41_v53 = vld [vmem:[%s2225_s0 + $0x70] sm:$0xff] }
   0xe   :  { %v81_v52 = vpack.c.bf16 %v60_v51, %v59_v50  ;;  %v42_v54 = vld [vmem:[%s2225_s0 + $0x78] sm:$0xff]  ;;  %v61_v56 = vld [vmem:[%s2225_s0 + $0x110] sm:$0xff]  ;;  %v43_v59 = vld [vmem:[%s2225_s0 + $0x80] sm:$0xff] }
   0xf   :  { %v72_v55 = vpack.c.bf16 %v42_v54, %v41_v53  ;;  %v62_v57 = vld [vmem:[%s2225_s0 + $0x118] sm:$0xff]  ;;  %v44_v60 = vld [vmem:[%s2225_s0 + $0x88] sm:$0xff]  ;;  %v63_v62 = vld [vmem:[%s2225_s0 + $0x120] sm:$0xff] }
  0x10   :  { %1216 = vmatpush3.bf16.msra.mxu1 %v1406_v17  ;;  %v82_v58 = vpack.c.bf16 %v62_v57, %v61_v56  ;;  %v73_v61 = vpack.c.bf16 %v44_v60, %v43_v59  ;;  %v64_v63 = vld [vmem:[%s2225_s0 + $0x128] sm:$0xff]  ;;  %v45_v2 = vld [vmem:[%s2225_s0 + $0x90] sm:$0xff]  ;;  %v46_v3 = vld [vmem:[%s2225_s0 + $0x98] sm:$0xff] }
  0x11   :  { %1217 = vmatprep.subr.bf16.mxu1 %v1421_v0  ;;  %v83_v1 = vpack.c.bf16 %v64_v63, %v63_v62  ;;  %v74_v4 = vpack.c.bf16 %v46_v3, %v45_v2  ;;  %v1684_v5 = vld [vmem:[%s2227_s2] ss:$0 sm:$0xff]  ;;  %v1418_v2 = vld [vmem:[%s2228_s5 + $0x28] sm:$0xff]  }
  0x12   :  { %1142 = vmatmul.mubr.msk.bf16.gmra.mrb[4].mxu0 %vm107_vm1, %v66_v11  ;;  %1182 = vmatmul.mubr.msk.bf16.gmra.mrb[4].mxu1 %vm107_vm1, %v76_v16  ;;  %v1413_v29 = vld [vmem:[%s2228_s5] sm:$0xff]  }
  0x13   :  { %1145 = vmatprep.mubr.msk.bf16.mxu0 %vm1422_vm0, %v1421_v0  ;;  %1185 = vmatprep.mubr.msk.bf16.mxu1 %vm1422_vm0, %v1421_v0  ;;  %v1417_v56 = vld [vmem:[%s2228_s5 + $0x20] sm:$0xff]  }
  0x14   :  { %1218 = vmatpush3.bf16.msra.mxu1 %v1407_v22  ;;  %1306 = vmatpush3.bf16.msra.mxu0 %v1413_v29 }
  0x15   :  { %1219 = vmatprep.subr.bf16.mxu1 %v1421_v0  ;;  %1307 = vmatprep.subr.bf16.mxu0 %v1421_v0 }
  0x18   :  { %1220 = vmatpush3.bf16.msra.mxu1 %v1408_v24 }
  0x19   :  { %1221 = vmatprep.subr.bf16.mxu1 %v1421_v0 }
  0x1a   :  { %1146 = vmatmul.mubr.msk.bf16.gmra.mrb[8].mxu0 %vm107_vm1, %v67_v21  ;;  %1186 = vmatmul.mubr.msk.bf16.gmra.mrb[8].mxu1 %vm107_vm1, %v77_v23 }
  0x1b   :  { %1149 = vmatprep.mubr.msk.bf16.mxu0 %vm1422_vm0, %v1421_v0  ;;  %1189 = vmatprep.mubr.msk.bf16.mxu1 %vm1422_vm0, %v1421_v0 }
  0x1c   :  { %1222 = vmatpush3.bf16.msra.mxu1 %v1409_v30 }
  0x1d   :  { %1223 = vmatprep.subr.bf16.mxu1 %v1421_v0 }
  0x20   :  { %1224 = vmatpush3.bf16.msra.mxu1 %v1410_v32 }
  0x21   :  { %1225 = vmatprep.subr.bf16.mxu1 %v1421_v0 }
  0x22   :  { %1150 = vmatmul.mubr.msk.bf16.gmra.mrb[12].mxu0 %vm107_vm1, %v68_v27  ;;  %1190 = vmatmul.mubr.msk.bf16.gmra.mrb[12].mxu1 %vm107_vm1, %v78_v31 }
  0x23   :  { %1153 = vmatprep.mubr.msk.bf16.mxu0 %vm1422_vm0, %v1421_v0  ;;  %1193 = vmatprep.mubr.msk.bf16.mxu1 %vm1422_vm0, %v1421_v0 }
  0x24   :  { %1226 = vmatpush3.bf16.msra.mxu1 %v1411_v38 }
  0x25   :  { %1227 = vmatprep.subr.bf16.mxu1 %v1421_v0 }
  0x28   :  { %1228 = vmatpush3.bf16.msra.mxu1 %v1412_v40  ;;  %v1414_v40 = vld [vmem:[%s2228_s5 + $0x8] sm:$0xff]  }
  0x29   :  { %1308 = vmatpush3.bf16.msra.mxu0 %v1414_v40 }
  0x2a   :  { %1154 = vmatmul.mubr.msk.bf16.gmra.mrb[16].mxu0 %vm107_vm1, %v69_v35  ;;  %1194 = vmatmul.mubr.msk.bf16.gmra.mrb[16].mxu1 %vm107_vm1, %v79_v39 }
  0x2b   :  { %1157 = vmatprep.mubr.msk.bf16.mxu0 %vm1422_vm0, %v1421_v0  ;;  %1197 = vmatprep.mubr.msk.bf16.mxu1 %vm1422_vm0, %v1421_v0 }
  0x2c   :  { %1309 = vmatprep.subr.bf16.mxu0 %v1421_v0 }
  0x32   :  { %1158 = vmatmul.mubr.msk.bf16.gmra.mrb[20].mxu0 %vm107_vm1, %v70_v43  ;;  %1198 = vmatmul.mubr.msk.bf16.gmra.mrb[20].mxu1 %vm107_vm1, %v80_v46  ;;  %v1415_v43 = vld [vmem:[%s2228_s5 + $0x10] sm:$0xff]  }
  0x33   :  { %1161 = vmatprep.mubr.msk.bf16.mxu0 %vm1422_vm0, %v1421_v0  ;;  %1201 = vmatprep.mubr.msk.bf16.mxu1 %vm1422_vm0, %v1421_v0 }
  0x34   :  { %1310 = vmatpush3.bf16.msra.mxu0 %v1415_v43 }
  0x35   :  { %1311 = vmatprep.subr.bf16.mxu0 %v1421_v0 }
  0x3a   :  { %1162 = vmatmul.mubr.msk.bf16.gmra.mrb[24].mxu0 %vm107_vm1, %v71_v49  ;;  %1202 = vmatmul.mubr.msk.bf16.gmra.mrb[24].mxu1 %vm107_vm1, %v81_v52  ;;  %v1416_v52 = vld [vmem:[%s2228_s5 + $0x18] sm:$0xff]  }
  0x3b   :  { %1165 = vmatprep.mubr.msk.bf16.mxu0 %vm1422_vm0, %v1421_v0  ;;  %1205 = vmatprep.mubr.msk.bf16.mxu1 %vm1422_vm0, %v1421_v0 }
  0x3c   :  { %1312 = vmatpush3.bf16.msra.mxu0 %v1416_v52 }
  0x3d   :  { %1313 = vmatprep.subr.bf16.mxu0 %v1421_v0 }
  0x40   :  { %1314 = vmatpush3.bf16.msra.mxu0 %v1417_v56 }
  0x41   :  { %1315 = vmatprep.subr.bf16.mxu0 %v1421_v0 }
  0x42   :  { %1166 = vmatmul.mubr.msk.bf16.gmra.mrb[28].mxu0 %vm107_vm1, %v72_v55  ;;  %1206 = vmatmul.mubr.msk.bf16.gmra.mrb[28].mxu1 %vm107_vm1, %v82_v58 }
  0x43   :  { %1169 = vmatprep.mubr.msk.bf16.mxu0 %vm1422_vm0, %v1421_v0  ;;  %1209 = vmatprep.mubr.msk.bf16.mxu1 %vm1422_vm0, %v1421_v0 }
  0x44   :  { %1316 = vmatpush3.bf16.msra.mxu0 %v1418_v2 }
  0x45   :  { %1317 = vmatprep.subr.bf16.mxu0 %v1421_v0 }
  0x4a   :  { %1170 = vmatmul.mubr.msk.bf16.gmra.mrb[32].mxu0 %vm107_vm1, %v73_v61  ;;  %1210 = vmatmul.mubr.msk.bf16.gmra.mrb[32].mxu1 %vm107_vm1, %v83_v1 }
  0x4b   :  { %1173 = vmatprep.mubr.msk.bf16.mxu0 %vm1422_vm0, %v1421_v0  ;;  %1229 = vmatprep.mubr.msk.bf16.mxu1 %vm1422_vm0, %v1421_v0 }
  0x52   :  { %1174 = vmatmul.mubr.msk.bf16.gmra.mrb[36].mxu0 %vm107_vm1, %v74_v4 }
  0x53   :  { %1321 = vmatprep.mubr.msk.bf16.mxu0 %vm1422_vm0, %v1421_v0 }
  0xdd   :  { %v199_v6 = vpop.f32.mrb[0].mxu0  ;;  %v1692_v12 = vpop.f32.mrb[0].mxu1 }
  0xde   :  { %v1139_v7 = vpop.f32.mrb[1].mxu0  ;;  %v1687_v9 = vadd.f32 %v1684_v5, %v199_v6  ;;  %v1179_v13 = vpop.f32.mrb[1].mxu1 }
  0xdf   :  { %v202_v8 = vpop.f32.mrb[2].mxu0  ;;  %v1696_v15 = vpop.f32.mrb[2].mxu1  ;;  %v1419_v7 = vld [vmem:[%s2228_s5 + $0x30] sm:$0xff]  }
  0xe0   :  { %v1690_v10 = vadd.f32 %v1684_v5, %v202_v8  ;;  %v1140_v11 = vpop.f32.mrb[3].mxu0  ;;  %v1180_v16 = vpop.f32.mrb[3].mxu1  ;;  %1318 = vmatpush3.bf16.msra.mxu0 %v1419_v7 }
  0xe1   :  { %1319 = vmatprep.subr.bf16.mxu0 %v1421_v0 }
  0xe2   :  { %v350_v14 = vpack.c.bf16 %v1690_v10, %v1687_v9 }
  0xe4   :  { %1230 = vmatmul.mubr.bf16.vlgmr.msra.gmra.mrb[36].mxu1 %v350_v14 }
  0xe5   :  { %v207_v17 = vpop.f32.mrb[4].mxu0  ;;  %1233 = vmatprep.mubr.msk.bf16.mxu1 %vm1422_vm0, %v1421_v0  ;;  %v1706_v23 = vpop.f32.mrb[4].mxu1 }
  0xe6   :  { %v1143_v18 = vpop.f32.mrb[5].mxu0  ;;  %v1701_v20 = vadd.f32 %v1684_v5, %v207_v17  ;;  %v1183_v24 = vpop.f32.mrb[5].mxu1 }
  0xe7   :  { %v210_v19 = vpop.f32.mrb[6].mxu0  ;;  %v1710_v26 = vpop.f32.mrb[6].mxu1 }
  0xe8   :  { %v1704_v21 = vadd.f32 %v1684_v5, %v210_v19  ;;  %v1144_v22 = vpop.f32.mrb[7].mxu0  ;;  %v1184_v27 = vpop.f32.mrb[7].mxu1 }
  0xe9   :  { %v1420_v22 = vld [vmem:[%s2228_s5 + $0x38] sm:$0xff]  }
  0xea   :  { %v351_v25 = vpack.c.bf16 %v1704_v21, %v1701_v20  ;;  %1320 = vmatpush3.bf16.msra.mxu0 %v1420_v22 }
  0xec   :  { %1234 = vmatmul.mubr.bf16.gmra.mrb[40].mxu1 %v351_v25 }
  0xed   :  { %v215_v28 = vpop.f32.mrb[8].mxu0  ;;  %1237 = vmatprep.mubr.msk.bf16.mxu1 %vm1422_vm0, %v1421_v0  ;;  %v1723_v35 = vpop.f32.mrb[8].mxu1 }
  0xee   :  { %v1147_v30 = vpop.f32.mrb[9].mxu0  ;;  %v1718_v32 = vadd.f32 %v1684_v5, %v215_v28  ;;  %v1187_v36 = vpop.f32.mrb[9].mxu1 }
  0xef   :  { %v218_v31 = vpop.f32.mrb[10].mxu0  ;;  %v1728_v38 = vpop.f32.mrb[10].mxu1 }
  0xf0   :  { %v1721_v33 = vadd.f32 %v1684_v5, %v218_v31  ;;  %v1148_v34 = vpop.f32.mrb[11].mxu0  ;;  %v1188_v39 = vpop.f32.mrb[11].mxu1 }
  0xf2   :  { %v352_v37 = vpack.c.bf16 %v1721_v33, %v1718_v32 }
  0xf4   :  { %1238 = vmatmul.mubr.bf16.gmra.mrb[44].mxu1 %v352_v37 }
  0xf5   :  { %v223_v41 = vpop.f32.mrb[12].mxu0  ;;  %1241 = vmatprep.mubr.msk.bf16.mxu1 %vm1422_vm0, %v1421_v0  ;;  %v1745_v48 = vpop.f32.mrb[12].mxu1 }
  0xf6   :  { %v1151_v42 = vpop.f32.mrb[13].mxu0  ;;  %v1740_v45 = vadd.f32 %v1684_v5, %v223_v41  ;;  %v1191_v49 = vpop.f32.mrb[13].mxu1 }
  0xf7   :  { %v226_v44 = vpop.f32.mrb[14].mxu0  ;;  %v1749_v51 = vpop.f32.mrb[14].mxu1 }
  0xf8   :  { %v1743_v46 = vadd.f32 %v1684_v5, %v226_v44  ;;  %v1152_v47 = vpop.f32.mrb[15].mxu0  ;;  %v1192_v53 = vpop.f32.mrb[15].mxu1 }
  0xfa   :  { %v353_v50 = vpack.c.bf16 %v1743_v46, %v1740_v45 }
  0xfc   :  { %1242 = vmatmul.mubr.bf16.gmra.mrb[48].mxu1 %v353_v50 }
  0xfd   :  { %v231_v54 = vpop.f32.mrb[16].mxu0  ;;  %1245 = vmatprep.mubr.msk.bf16.mxu1 %vm1422_vm0, %v1421_v0  ;;  %v1767_v61 = vpop.f32.mrb[16].mxu1 }
  0xfe   :  { %v1155_v55 = vpop.f32.mrb[17].mxu0  ;;  %v1762_v58 = vadd.f32 %v1684_v5, %v231_v54  ;;  %v1195_v62 = vpop.f32.mrb[17].mxu1 }
  0xff   :  { %v234_v57 = vpop.f32.mrb[18].mxu0  ;;  %v1771_v1 = vpop.f32.mrb[18].mxu1 }
 0x100   :  { %v1765_v59 = vadd.f32 %v1684_v5, %v234_v57  ;;  %v1156_v60 = vpop.f32.mrb[19].mxu0  ;;  %v1196_v3 = vpop.f32.mrb[19].mxu1 }
 0x102   :  { %v354_v63 = vpack.c.bf16 %v1765_v59, %v1762_v58 }
 0x104   :  { %1246 = vmatmul.mubr.bf16.gmra.mrb[52].mxu1 %v354_v63 }
 0x105   :  { %v239_v4 = vpop.f32.mrb[20].mxu0  ;;  %1249 = vmatprep.mubr.msk.bf16.mxu1 %vm1422_vm0, %v1421_v0  ;;  %v1789_v16 = vpop.f32.mrb[20].mxu1 }
 0x106   :  { %v1159_v6 = vpop.f32.mrb[21].mxu0  ;;  %v1784_v11 = vadd.f32 %v1684_v5, %v239_v4  ;;  %v1199_v17 = vpop.f32.mrb[21].mxu1 }
 0x107   :  { %v242_v8 = vpop.f32.mrb[22].mxu0  ;;  %v1793_v19 = vpop.f32.mrb[22].mxu1 }
 0x108   :  { %v1787_v13 = vadd.f32 %v1684_v5, %v242_v8  ;;  %v1160_v14 = vpop.f32.mrb[23].mxu0  ;;  %v1200_v24 = vpop.f32.mrb[23].mxu1 }
 0x10a   :  { %v355_v18 = vpack.c.bf16 %v1787_v13, %v1784_v11 }
 0x10c   :  { %1250 = vmatmul.mubr.bf16.gmra.mrb[56].mxu1 %v355_v18 }
 0x10d   :  { %v247_v25 = vpop.f32.mrb[24].mxu0  ;;  %1253 = vmatprep.mubr.msk.bf16.mxu1 %vm1422_vm0, %v1421_v0  ;;  %v1807_v34 = vpop.f32.mrb[24].mxu1 }
 0x10e   :  { %v1163_v27 = vpop.f32.mrb[25].mxu0  ;;  %v1802_v29 = vadd.f32 %v1684_v5, %v247_v25  ;;  %v1203_v36 = vpop.f32.mrb[25].mxu1 }
 0x10f   :  { %v250_v28 = vpop.f32.mrb[26].mxu0  ;;  %v1811_v39 = vpop.f32.mrb[26].mxu1 }
 0x110   :  { %v1805_v30 = vadd.f32 %v1684_v5, %v250_v28  ;;  %v1164_v31 = vpop.f32.mrb[27].mxu0  ;;  %v1204_v40 = vpop.f32.mrb[27].mxu1  ;;  %v1849_v28 = vadd.f32 %v1684_v5, %v1692_v12 }
 0x111   :  { %v1853_v31 = vadd.f32 %v1684_v5, %v1696_v15  ;;  %v1865_v40 = vadd.f32 %v1684_v5, %v1710_v26  ;;  %v1873_v15 = vadd.f32 %v1684_v5, %v1723_v35  ;;  %v1885_v26 = vadd.f32 %v1684_v5, %v1745_v48 }
 0x112   :  { %v356_v37 = vpack.c.bf16 %v1805_v30, %v1802_v29 }
 0x113   :  { %v360_v36 = vpack.c.bf16 %v1853_v31, %v1849_v28 }
 0x114   :  { %1254 = vmatmul.mubr.bf16.gmra.mrb[60].mxu1 %v356_v37  ;;  %v1861_v37 = vadd.f32 %v1684_v5, %v1706_v23 }
 0x115   :  { %v255_v41 = vpop.f32.mrb[28].mxu0  ;;  %1257 = vmatprep.mubr.msk.bf16.mxu1 %vm1422_vm0, %v1421_v0  ;;  %v1821_v50 = vpop.f32.mrb[28].mxu1 }
 0x116   :  { %v1167_v42 = vpop.f32.mrb[29].mxu0  ;;  %v1816_v44 = vadd.f32 %v1684_v5, %v255_v41  ;;  %v1207_v52 = vpop.f32.mrb[29].mxu1  ;;  %v361_v12 = vpack.c.bf16 %v1865_v40, %v1861_v37  ;;  %v1877_v41 = vadd.f32 %v1684_v5, %v1728_v38  ;;  %v1897_v38 = vadd.f32 %v1684_v5, %v1767_v61 }
 0x117   :  { %v258_v43 = vpop.f32.mrb[30].mxu0  ;;  %v338_v54 = vpop.f32.mrb[30].mxu1  ;;  %v1889_v42 = vadd.f32 %v1684_v5, %v1749_v51  ;;  %v1909_v51 = vadd.f32 %v1684_v5, %v1789_v16  ;;  %v1925_v52 = vadd.f32 %v1684_v5, %v1811_v39 }
 0x118   :  { %v1819_v47 = vadd.f32 %v1684_v5, %v258_v43  ;;  %v1168_v49 = vpop.f32.mrb[31].mxu0  ;;  %v1208_v55 = vpop.f32.mrb[31].mxu1  ;;  %v362_v23 = vpack.c.bf16 %v1877_v41, %v1873_v15  ;;  %v1901_v43 = vadd.f32 %v1684_v5, %v1771_v1  ;;  %v1921_v1 = vadd.f32 %v1684_v5, %v1807_v34 }
 0x119   :  { %v363_v35 = vpack.c.bf16 %v1889_v42, %v1885_v26  ;;  %v1913_v49 = vadd.f32 %v1684_v5, %v1793_v19  ;;  %v1933_v19 = vadd.f32 %v1684_v5, %v1821_v50 }
 0x11a   :  { %v357_v53 = vpack.c.bf16 %v1819_v47, %v1816_v44  ;;  %v364_v48 = vpack.c.bf16 %v1901_v43, %v1897_v38  ;;  %v366_v16 = vpack.c.bf16 %v1925_v52, %v1921_v1 }
 0x11b   :  { %v365_v61 = vpack.c.bf16 %v1913_v49, %v1909_v51 }
 0x11c   :  { %1258 = vmatmul.mubr.bf16.gmra.mrb[64].mxu1 %v357_v53  ;;  %v1936_v53 = vadd.f32 %v1684_v5, %v338_v54  ;;  %v1953_v54 = vld [vmem:[%s2229_s4] ss:$0 sm:$0xff] }
 0x11d   :  { %v263_v56 = vpop.f32.mrb[32].mxu0  ;;  %1261 = vmatprep.mubr.msk.bf16.mxu1 %vm1422_vm0, %v1421_v0  ;;  %v343_v3 = vpop.f32.mrb[32].mxu1 }
 0x11e   :  { %v1171_v57 = vpop.f32.mrb[33].mxu0  ;;  %v1828_v62 = vadd.f32 %v1684_v5, %v263_v56  ;;  %v1211_v4 = vpop.f32.mrb[33].mxu1  ;;  %v367_v34 = vpack.c.bf16 %v1936_v53, %v1933_v19  ;;  %v1943_v39 = vadd.f32 %v1684_v5, %v343_v3 }
 0x11f   :  { %v266_v60 = vpop.f32.mrb[34].mxu0  ;;  %v346_v7 = vpop.f32.mrb[34].mxu1 }
 0x120   :  { %v1831_v63 = vadd.f32 %v1684_v5, %v266_v60  ;;  %v1172_v2 = vpop.f32.mrb[35].mxu0  ;;  %v1212_v8 = vpop.f32.mrb[35].mxu1  ;;  %v1946_v55 = vadd.f32 %v1684_v5, %v346_v7 }
 0x122   :  { %v358_v6 = vpack.c.bf16 %v1831_v63, %v1828_v62  ;;  %v368_v50 = vpack.c.bf16 %v1946_v55, %v1943_v39 }
 0x124   :  { %1262 = vmatmul.mubr.bf16.gmra.mrb[68].mxu1 %v358_v6 }
 0x125   :  { %v271_v14 = vpop.f32.mrb[36].mxu0  ;;  %1265 = vmatprep.mubr.msk.bf16.mxu1 %vm1422_vm0, %v1421_v0 }
 0x126   :  { %v1175_v17 = vpop.f32.mrb[37].mxu0  ;;  %v1838_v22 = vadd.f32 %v1684_v5, %v271_v14 }
 0x127   :  { %v274_v18 = vpop.f32.mrb[38].mxu0 }
 0x128   :  { %v1841_v24 = vadd.f32 %v1684_v5, %v274_v18  ;;  %v1176_v25 = vpop.f32.mrb[39].mxu0 }
 0x12a   :  { %v359_v27 = vpack.c.bf16 %v1841_v24, %v1838_v22 }
 0x12c   :  { %1266 = vmatmul.mubr.bf16.gmra.mrb[72].mxu1 %v359_v27 }
 0x12d   :  { %1269 = vmatprep.mubr.msk.bf16.mxu1 %vm1422_vm0, %v1421_v0 }
 0x134   :  { %1270 = vmatmul.mubr.bf16.gmra.mrb[76].mxu1 %v360_v36 }
 0x135   :  { %1273 = vmatprep.mubr.msk.bf16.mxu1 %vm1422_vm0, %v1421_v0 }
 0x13c   :  { %1274 = vmatmul.mubr.bf16.gmra.mrb[80].mxu1 %v361_v12 }
 0x13d   :  { %1277 = vmatprep.mubr.msk.bf16.mxu1 %vm1422_vm0, %v1421_v0 }
 0x144   :  { %1278 = vmatmul.mubr.bf16.gmra.mrb[84].mxu1 %v362_v23 }
 0x145   :  { %1281 = vmatprep.mubr.msk.bf16.mxu1 %vm1422_vm0, %v1421_v0 }
 0x14c   :  { %1282 = vmatmul.mubr.bf16.gmra.mrb[88].mxu1 %v363_v35 }
 0x14d   :  { %1285 = vmatprep.mubr.msk.bf16.mxu1 %vm1422_vm0, %v1421_v0 }
 0x154   :  { %1286 = vmatmul.mubr.bf16.gmra.mrb[92].mxu1 %v364_v48 }
 0x155   :  { %1289 = vmatprep.mubr.msk.bf16.mxu1 %vm1422_vm0, %v1421_v0 }
 0x15c   :  { %1290 = vmatmul.mubr.bf16.gmra.mrb[96].mxu1 %v365_v61 }
 0x15d   :  { %1293 = vmatprep.mubr.msk.bf16.mxu1 %vm1422_vm0, %v1421_v0 }
 0x164   :  { %1294 = vmatmul.mubr.bf16.gmra.mrb[100].mxu1 %v366_v16 }
 0x165   :  { %1297 = vmatprep.mubr.msk.bf16.mxu1 %vm1422_vm0, %v1421_v0 }
 0x16c   :  { %1298 = vmatmul.mubr.bf16.gmra.mrb[104].mxu1 %v367_v34 }
 0x16d   :  { %1301 = vmatprep.mubr.msk.bf16.mxu1 %vm1422_vm0, %v1421_v0 }
 0x174   :  { %1302 = vmatmul.mubr.bf16.gmra.mrb[108].mxu1 %v368_v50 }
 0x1b7   :  { %v474_v56 = vpop.f32.mrb[36].mxu1 }
 0x1b8   :  { %v475_v57 = vadd.f32 %v1953_v54, %v474_v56  ;;  %v1231_v60 = vpop.f32.mrb[37].mxu1 }
 0x1b9   :  { %v477_v2 = vpop.f32.mrb[38].mxu1 }
 0x1ba   :  { %v478_v3 = vadd.f32 %v1953_v54, %v477_v2  ;;  %v1232_v4 = vpop.f32.mrb[39].mxu1  ;;  %v625_v6 = vmax.f32 %v475_v57, 0.0 }
 0x1bc   :  { %v626_v5 = vmax.f32 %v478_v3, 0.0 }
 0x1be   :  { %v663_v7 = vpack.c.bf16 %v626_v5, %v625_v6 }
 0x1bf   :  { %v482_v8 = vpop.f32.mrb[40].mxu1 }
 0x1c0   :  { %v483_v14 = vadd.f32 %v1953_v54, %v482_v8  ;;  %v1235_v17 = vpop.f32.mrb[41].mxu1  ;;  %1322 = vmatmul.mubr.bf16.vlgmr.msra.gmra.mrb[40].mxu0 %v663_v7 }
 0x1c1   :  { %v485_v18 = vpop.f32.mrb[42].mxu1  ;;  %1325 = vmatprep.mubr.msk.bf16.mxu0 %vm1422_vm0, %v1421_v0 }
 0x1c2   :  { %v486_v25 = vadd.f32 %v1953_v54, %v485_v18  ;;  %v1236_v27 = vpop.f32.mrb[43].mxu1  ;;  %v627_v36 = vmax.f32 %v483_v14, 0.0 }
 0x1c4   :  { %v628_v12 = vmax.f32 %v486_v25, 0.0 }
 0x1c6   :  { %v664_v23 = vpack.c.bf16 %v628_v12, %v627_v36 }
 0x1c7   :  { %v490_v35 = vpop.f32.mrb[44].mxu1 }
 0x1c8   :  { %v491_v48 = vadd.f32 %v1953_v54, %v490_v35  ;;  %v1239_v61 = vpop.f32.mrb[45].mxu1  ;;  %1326 = vmatmul.mubr.bf16.gmra.mrb[44].mxu0 %v664_v23 }
 0x1c9   :  { %v493_v16 = vpop.f32.mrb[46].mxu1  ;;  %1329 = vmatprep.mubr.msk.bf16.mxu0 %vm1422_vm0, %v1421_v0 }
 0x1ca   :  { %v494_v34 = vadd.f32 %v1953_v54, %v493_v16  ;;  %v1240_v50 = vpop.f32.mrb[47].mxu1  ;;  %v629_v56 = vmax.f32 %v491_v48, 0.0 }
 0x1cc   :  { %v630_v57 = vmax.f32 %v494_v34, 0.0 }
 0x1ce   :  { %v665_v60 = vpack.c.bf16 %v630_v57, %v629_v56 }
 0x1cf   :  { %v498_v2 = vpop.f32.mrb[48].mxu1 }
 0x1d0   :  { %v499_v3 = vadd.f32 %v1953_v54, %v498_v2  ;;  %v1243_v4 = vpop.f32.mrb[49].mxu1  ;;  %1330 = vmatmul.mubr.bf16.gmra.mrb[48].mxu0 %v665_v60 }
 0x1d1   :  { %v501_v6 = vpop.f32.mrb[50].mxu1  ;;  %1333 = vmatprep.mubr.msk.bf16.mxu0 %vm1422_vm0, %v1421_v0 }
 0x1d2   :  { %v502_v5 = vadd.f32 %v1953_v54, %v501_v6  ;;  %v1244_v7 = vpop.f32.mrb[51].mxu1  ;;  %v631_v8 = vmax.f32 %v499_v3, 0.0 }
 0x1d4   :  { %v632_v14 = vmax.f32 %v502_v5, 0.0 }
 0x1d6   :  { %v666_v17 = vpack.c.bf16 %v632_v14, %v631_v8 }
 0x1d7   :  { %v506_v18 = vpop.f32.mrb[52].mxu1 }
 0x1d8   :  { %v507_v25 = vadd.f32 %v1953_v54, %v506_v18  ;;  %v1247_v27 = vpop.f32.mrb[53].mxu1  ;;  %1334 = vmatmul.mubr.bf16.gmra.mrb[52].mxu0 %v666_v17 }
 0x1d9   :  { %v509_v36 = vpop.f32.mrb[54].mxu1  ;;  %1337 = vmatprep.mubr.msk.bf16.mxu0 %vm1422_vm0, %v1421_v0 }
 0x1da   :  { %v510_v12 = vadd.f32 %v1953_v54, %v509_v36  ;;  %v1248_v23 = vpop.f32.mrb[55].mxu1  ;;  %v633_v35 = vmax.f32 %v507_v25, 0.0 }
 0x1dc   :  { %v634_v48 = vmax.f32 %v510_v12, 0.0 }
 0x1de   :  { %v667_v61 = vpack.c.bf16 %v634_v48, %v633_v35 }
 0x1df   :  { %v514_v16 = vpop.f32.mrb[56].mxu1 }
 0x1e0   :  { %v515_v34 = vadd.f32 %v1953_v54, %v514_v16  ;;  %v1251_v50 = vpop.f32.mrb[57].mxu1  ;;  %1338 = vmatmul.mubr.bf16.gmra.mrb[56].mxu0 %v667_v61 }
 0x1e1   :  { %v517_v56 = vpop.f32.mrb[58].mxu1  ;;  %1341 = vmatprep.mubr.msk.bf16.mxu0 %vm1422_vm0, %v1421_v0 }
 0x1e2   :  { %v518_v57 = vadd.f32 %v1953_v54, %v517_v56  ;;  %v1252_v60 = vpop.f32.mrb[59].mxu1  ;;  %v635_v2 = vmax.f32 %v515_v34, 0.0 }
 0x1e4   :  { %v636_v3 = vmax.f32 %v518_v57, 0.0 }
 0x1e6   :  { %v668_v4 = vpack.c.bf16 %v636_v3, %v635_v2 }
 0x1e7   :  { %v522_v6 = vpop.f32.mrb[60].mxu1 }
 0x1e8   :  { %v523_v5 = vadd.f32 %v1953_v54, %v522_v6  ;;  %v1255_v7 = vpop.f32.mrb[61].mxu1  ;;  %1342 = vmatmul.mubr.bf16.gmra.mrb[60].mxu0 %v668_v4 }
 0x1e9   :  { %v525_v8 = vpop.f32.mrb[62].mxu1  ;;  %1345 = vmatprep.mubr.msk.bf16.mxu0 %vm1422_vm0, %v1421_v0 }
 0x1ea   :  { %v526_v14 = vadd.f32 %v1953_v54, %v525_v8  ;;  %v1256_v17 = vpop.f32.mrb[63].mxu1  ;;  %v637_v18 = vmax.f32 %v523_v5, 0.0 }
 0x1ec   :  { %v638_v25 = vmax.f32 %v526_v14, 0.0 }
 0x1ee   :  { %v669_v27 = vpack.c.bf16 %v638_v25, %v637_v18 }
 0x1ef   :  { %v530_v36 = vpop.f32.mrb[64].mxu1 }
 0x1f0   :  { %v531_v12 = vadd.f32 %v1953_v54, %v530_v36  ;;  %v1259_v23 = vpop.f32.mrb[65].mxu1  ;;  %1346 = vmatmul.mubr.bf16.gmra.mrb[64].mxu0 %v669_v27 }
 0x1f1   :  { %v533_v35 = vpop.f32.mrb[66].mxu1  ;;  %1349 = vmatprep.mubr.msk.bf16.mxu0 %vm1422_vm0, %v1421_v0 }
 0x1f2   :  { %v534_v48 = vadd.f32 %v1953_v54, %v533_v35  ;;  %v1260_v61 = vpop.f32.mrb[67].mxu1  ;;  %v639_v16 = vmax.f32 %v531_v12, 0.0 }
 0x1f4   :  { %v640_v34 = vmax.f32 %v534_v48, 0.0 }
 0x1f6   :  { %v670_v50 = vpack.c.bf16 %v640_v34, %v639_v16 }
 0x1f7   :  { %v538_v56 = vpop.f32.mrb[68].mxu1 }
 0x1f8   :  { %v539_v57 = vadd.f32 %v1953_v54, %v538_v56  ;;  %v1263_v60 = vpop.f32.mrb[69].mxu1  ;;  %1350 = vmatmul.mubr.bf16.gmra.mrb[68].mxu0 %v670_v50 }
 0x1f9   :  { %v541_v2 = vpop.f32.mrb[70].mxu1  ;;  %1353 = vmatprep.mubr.msk.bf16.mxu0 %vm1422_vm0, %v1421_v0 }
 0x1fa   :  { %v542_v3 = vadd.f32 %v1953_v54, %v541_v2  ;;  %v1264_v4 = vpop.f32.mrb[71].mxu1  ;;  %v641_v6 = vmax.f32 %v539_v57, 0.0 }
 0x1fc   :  { %v642_v5 = vmax.f32 %v542_v3, 0.0 }
 0x1fe   :  { %v671_v7 = vpack.c.bf16 %v642_v5, %v641_v6 }
 0x1ff   :  { %v546_v8 = vpop.f32.mrb[72].mxu1 }
 0x200   :  { %v547_v14 = vadd.f32 %v1953_v54, %v546_v8  ;;  %v1267_v17 = vpop.f32.mrb[73].mxu1  ;;  %1354 = vmatmul.mubr.bf16.gmra.mrb[72].mxu0 %v671_v7 }
 0x201   :  { %v549_v18 = vpop.f32.mrb[74].mxu1  ;;  %1357 = vmatprep.mubr.msk.bf16.mxu0 %vm1422_vm0, %v1421_v0 }
 0x202   :  { %v550_v25 = vadd.f32 %v1953_v54, %v549_v18  ;;  %v1268_v27 = vpop.f32.mrb[75].mxu1  ;;  %v643_v36 = vmax.f32 %v547_v14, 0.0 }
 0x204   :  { %v644_v12 = vmax.f32 %v550_v25, 0.0 }
 0x206   :  { %v672_v23 = vpack.c.bf16 %v644_v12, %v643_v36 }
 0x207   :  { %v554_v35 = vpop.f32.mrb[76].mxu1 }
 0x208   :  { %v555_v48 = vadd.f32 %v1953_v54, %v554_v35  ;;  %v1271_v61 = vpop.f32.mrb[77].mxu1  ;;  %1358 = vmatmul.mubr.bf16.gmra.mrb[76].mxu0 %v672_v23 }
 0x209   :  { %v557_v16 = vpop.f32.mrb[78].mxu1  ;;  %1361 = vmatprep.mubr.msk.bf16.mxu0 %vm1422_vm0, %v1421_v0 }
 0x20a   :  { %v558_v34 = vadd.f32 %v1953_v54, %v557_v16  ;;  %v1272_v50 = vpop.f32.mrb[79].mxu1  ;;  %v645_v56 = vmax.f32 %v555_v48, 0.0 }
 0x20c   :  { %v646_v57 = vmax.f32 %v558_v34, 0.0 }
 0x20e   :  { %v673_v60 = vpack.c.bf16 %v646_v57, %v645_v56 }
 0x20f   :  { %v562_v2 = vpop.f32.mrb[80].mxu1 }
 0x210   :  { %v563_v3 = vadd.f32 %v1953_v54, %v562_v2  ;;  %v1275_v4 = vpop.f32.mrb[81].mxu1  ;;  %1362 = vmatmul.mubr.bf16.gmra.mrb[80].mxu0 %v673_v60 }
 0x211   :  { %v565_v6 = vpop.f32.mrb[82].mxu1  ;;  %1365 = vmatprep.mubr.msk.bf16.mxu0 %vm1422_vm0, %v1421_v0 }
 0x212   :  { %v566_v5 = vadd.f32 %v1953_v54, %v565_v6  ;;  %v1276_v7 = vpop.f32.mrb[83].mxu1  ;;  %v647_v8 = vmax.f32 %v563_v3, 0.0 }
 0x214   :  { %v648_v14 = vmax.f32 %v566_v5, 0.0 }
 0x216   :  { %v674_v17 = vpack.c.bf16 %v648_v14, %v647_v8 }
 0x217   :  { %v570_v18 = vpop.f32.mrb[84].mxu1 }
 0x218   :  { %v571_v25 = vadd.f32 %v1953_v54, %v570_v18  ;;  %v1279_v27 = vpop.f32.mrb[85].mxu1  ;;  %1366 = vmatmul.mubr.bf16.gmra.mrb[84].mxu0 %v674_v17 }
 0x219   :  { %v573_v36 = vpop.f32.mrb[86].mxu1  ;;  %1369 = vmatprep.mubr.msk.bf16.mxu0 %vm1422_vm0, %v1421_v0 }
 0x21a   :  { %v574_v12 = vadd.f32 %v1953_v54, %v573_v36  ;;  %v1280_v23 = vpop.f32.mrb[87].mxu1  ;;  %v649_v35 = vmax.f32 %v571_v25, 0.0 }
 0x21c   :  { %v650_v48 = vmax.f32 %v574_v12, 0.0 }
 0x21e   :  { %v675_v61 = vpack.c.bf16 %v650_v48, %v649_v35 }
 0x21f   :  { %v578_v16 = vpop.f32.mrb[88].mxu1 }
 0x220   :  { %v579_v34 = vadd.f32 %v1953_v54, %v578_v16  ;;  %v1283_v50 = vpop.f32.mrb[89].mxu1  ;;  %1370 = vmatmul.mubr.bf16.gmra.mrb[88].mxu0 %v675_v61 }
 0x221   :  { %v581_v56 = vpop.f32.mrb[90].mxu1  ;;  %1373 = vmatprep.mubr.msk.bf16.mxu0 %vm1422_vm0, %v1421_v0 }
 0x222   :  { %v582_v57 = vadd.f32 %v1953_v54, %v581_v56  ;;  %v1284_v60 = vpop.f32.mrb[91].mxu1  ;;  %v651_v2 = vmax.f32 %v579_v34, 0.0 }
 0x224   :  { %v652_v3 = vmax.f32 %v582_v57, 0.0 }
 0x226   :  { %v676_v4 = vpack.c.bf16 %v652_v3, %v651_v2 }
 0x227   :  { %v586_v6 = vpop.f32.mrb[92].mxu1 }
 0x228   :  { %v587_v5 = vadd.f32 %v1953_v54, %v586_v6  ;;  %v1287_v7 = vpop.f32.mrb[93].mxu1  ;;  %1374 = vmatmul.mubr.bf16.gmra.mrb[92].mxu0 %v676_v4 }
 0x229   :  { %v589_v8 = vpop.f32.mrb[94].mxu1  ;;  %1377 = vmatprep.mubr.msk.bf16.mxu0 %vm1422_vm0, %v1421_v0 }
 0x22a   :  { %v590_v14 = vadd.f32 %v1953_v54, %v589_v8  ;;  %v1288_v17 = vpop.f32.mrb[95].mxu1  ;;  %v653_v18 = vmax.f32 %v587_v5, 0.0 }
 0x22c   :  { %v654_v25 = vmax.f32 %v590_v14, 0.0 }
 0x22e   :  { %v677_v27 = vpack.c.bf16 %v654_v25, %v653_v18 }
 0x22f   :  { %v594_v36 = vpop.f32.mrb[96].mxu1 }
 0x230   :  { %v595_v12 = vadd.f32 %v1953_v54, %v594_v36  ;;  %v1291_v23 = vpop.f32.mrb[97].mxu1  ;;  %1378 = vmatmul.mubr.bf16.gmra.mrb[96].mxu0 %v677_v27 }
 0x231   :  { %v597_v35 = vpop.f32.mrb[98].mxu1  ;;  %1381 = vmatprep.mubr.msk.bf16.mxu0 %vm1422_vm0, %v1421_v0 }
 0x232   :  { %v598_v48 = vadd.f32 %v1953_v54, %v597_v35  ;;  %v1292_v61 = vpop.f32.mrb[99].mxu1  ;;  %v655_v16 = vmax.f32 %v595_v12, 0.0 }
 0x234   :  { %v656_v34 = vmax.f32 %v598_v48, 0.0 }
 0x236   :  { %v678_v50 = vpack.c.bf16 %v656_v34, %v655_v16 }
 0x237   :  { %v602_v56 = vpop.f32.mrb[100].mxu1 }
 0x238   :  { %v603_v57 = vadd.f32 %v1953_v54, %v602_v56  ;;  %v1295_v60 = vpop.f32.mrb[101].mxu1  ;;  %1382 = vmatmul.mubr.bf16.gmra.mrb[100].mxu0 %v678_v50 }
 0x239   :  { %v605_v2 = vpop.f32.mrb[102].mxu1  ;;  %1385 = vmatprep.mubr.msk.bf16.mxu0 %vm1422_vm0, %v1421_v0 }
 0x23a   :  { %v606_v3 = vadd.f32 %v1953_v54, %v605_v2  ;;  %v1296_v4 = vpop.f32.mrb[103].mxu1  ;;  %v657_v6 = vmax.f32 %v603_v57, 0.0  ;;  %v2032_v2 = vld [vmem:[%s2230_s6] ss:$0 sm:$0xff] }
 0x23c   :  { %v658_v5 = vmax.f32 %v606_v3, 0.0 }
 0x23e   :  { %v679_v7 = vpack.c.bf16 %v658_v5, %v657_v6 }
 0x23f   :  { %v610_v8 = vpop.f32.mrb[104].mxu1 }
 0x240   :  { %v611_v14 = vadd.f32 %v1953_v54, %v610_v8  ;;  %v1299_v17 = vpop.f32.mrb[105].mxu1  ;;  %1386 = vmatmul.mubr.bf16.gmra.mrb[104].mxu0 %v679_v7 }
 0x241   :  { %v613_v18 = vpop.f32.mrb[106].mxu1  ;;  %1389 = vmatprep.mubr.msk.bf16.mxu0 %vm1422_vm0, %v1421_v0 }
 0x242   :  { %v614_v25 = vadd.f32 %v1953_v54, %v613_v18  ;;  %v1300_v27 = vpop.f32.mrb[107].mxu1  ;;  %v659_v36 = vmax.f32 %v611_v14, 0.0 }
 0x244   :  { %v660_v12 = vmax.f32 %v614_v25, 0.0 }
 0x246   :  { %v680_v23 = vpack.c.bf16 %v660_v12, %v659_v36 }
 0x247   :  { %v618_v35 = vpop.f32.mrb[108].mxu1 }
 0x248   :  { %v619_v48 = vadd.f32 %v1953_v54, %v618_v35  ;;  %v1303_v61 = vpop.f32.mrb[109].mxu1  ;;  %1390 = vmatmul.mubr.bf16.gmra.mrb[108].mxu0 %v680_v23 }
 0x249   :  { %v621_v16 = vpop.f32.mrb[110].mxu1  ;;  %1393 = vmatprep.mubr.msk.bf16.mxu0 %vm1422_vm0, %v1421_v0 }
 0x24a   :  { %v622_v34 = vadd.f32 %v1953_v54, %v621_v16  ;;  %v1304_v50 = vpop.f32.mrb[111].mxu1  ;;  %v661_v56 = vmax.f32 %v619_v48, 0.0 }
 0x24c   :  { %v662_v57 = vmax.f32 %v622_v34, 0.0 }
 0x24e   :  { %v681_v60 = vpack.c.bf16 %v662_v57, %v661_v56 }
 0x250   :  { %1394 = vmatmul.mubr.bf16.gmra.mrb[112].mxu0 %v681_v60 }
 0x293   :  { %v787_v3 = vpop.f32.mrb[40].mxu0 }
 0x294   :  { %v788_v4 = vadd.f32 %v2032_v2, %v787_v3  ;;  %v1323_v6 = vpop.f32.mrb[41].mxu0 }
 0x295   :  { %v790_v5 = vpop.f32.mrb[42].mxu0 }
 0x296   :  { %v938_v7 = vadd.f32 %v788_v4, %v1687_v9  ;;  %v791_v0 = vadd.f32 %v2032_v2, %v790_v5  ;;  %v1324_v54 = vpop.f32.mrb[43].mxu0 }
 0x298   :  { %976 = vst [vmem:[%s2231_s7] sm:$0xff] %v938_v7  ;;  %v939_v8 = vadd.f32 %v791_v0, %v1690_v10 }
 0x29a   :  { %977 = vst [vmem:[%s2231_s7 + $0x8] sm:$0xff] %v939_v8 }
 0x29b   :  { %v795_v14 = vpop.f32.mrb[44].mxu0 }
 0x29c   :  { %v796_v17 = vadd.f32 %v2032_v2, %v795_v14  ;;  %v1327_v18 = vpop.f32.mrb[45].mxu0 }
 0x29d   :  { %v798_v25 = vpop.f32.mrb[46].mxu0 }
 0x29e   :  { %v940_v9 = vadd.f32 %v796_v17, %v1701_v20  ;;  %v799_v27 = vadd.f32 %v2032_v2, %v798_v25  ;;  %v1328_v36 = vpop.f32.mrb[47].mxu0 }
 0x2a0   :  { %978 = vst [vmem:[%s2231_s7 + $0x10] sm:$0xff] %v940_v9  ;;  %v941_v10 = vadd.f32 %v799_v27, %v1704_v21 }
 0x2a2   :  { %979 = vst [vmem:[%s2231_s7 + $0x18] sm:$0xff] %v941_v10 }
 0x2a3   :  { %v803_v12 = vpop.f32.mrb[48].mxu0 }
 0x2a4   :  { %v804_v23 = vadd.f32 %v2032_v2, %v803_v12  ;;  %v1331_v35 = vpop.f32.mrb[49].mxu0 }
 0x2a5   :  { %v806_v48 = vpop.f32.mrb[50].mxu0 }
 0x2a6   :  { %v942_v20 = vadd.f32 %v804_v23, %v1718_v32  ;;  %v807_v61 = vadd.f32 %v2032_v2, %v806_v48  ;;  %v1332_v16 = vpop.f32.mrb[51].mxu0 }
 0x2a8   :  { %980 = vst [vmem:[%s2231_s7 + $0x20] sm:$0xff] %v942_v20  ;;  %v943_v21 = vadd.f32 %v807_v61, %v1721_v33 }
 0x2aa   :  { %981 = vst [vmem:[%s2231_s7 + $0x28] sm:$0xff] %v943_v21 }
 0x2ab   :  { %v811_v34 = vpop.f32.mrb[52].mxu0 }
 0x2ac   :  { %v812_v50 = vadd.f32 %v2032_v2, %v811_v34  ;;  %v1335_v56 = vpop.f32.mrb[53].mxu0 }
 0x2ad   :  { %v814_v57 = vpop.f32.mrb[54].mxu0 }
 0x2ae   :  { %v944_v32 = vadd.f32 %v812_v50, %v1740_v45  ;;  %v815_v60 = vadd.f32 %v2032_v2, %v814_v57  ;;  %v1336_v3 = vpop.f32.mrb[55].mxu0 }
 0x2b0   :  { %982 = vst [vmem:[%s2231_s7 + $0x30] sm:$0xff] %v944_v32  ;;  %v945_v33 = vadd.f32 %v815_v60, %v1743_v46 }
 0x2b2   :  { %983 = vst [vmem:[%s2231_s7 + $0x38] sm:$0xff] %v945_v33 }
 0x2b3   :  { %v819_v4 = vpop.f32.mrb[56].mxu0 }
 0x2b4   :  { %v820_v6 = vadd.f32 %v2032_v2, %v819_v4  ;;  %v1339_v5 = vpop.f32.mrb[57].mxu0 }
 0x2b5   :  { %v822_v7 = vpop.f32.mrb[58].mxu0 }
 0x2b6   :  { %v946_v45 = vadd.f32 %v820_v6, %v1762_v58  ;;  %v823_v0 = vadd.f32 %v2032_v2, %v822_v7  ;;  %v1340_v54 = vpop.f32.mrb[59].mxu0 }
 0x2b8   :  { %984 = vst [vmem:[%s2231_s7 + $0x40] sm:$0xff] %v946_v45  ;;  %v947_v46 = vadd.f32 %v823_v0, %v1765_v59 }
 0x2ba   :  { %985 = vst [vmem:[%s2231_s7 + $0x48] sm:$0xff] %v947_v46 }
 0x2bb   :  { %v827_v8 = vpop.f32.mrb[60].mxu0 }
 0x2bc   :  { %v828_v14 = vadd.f32 %v2032_v2, %v827_v8  ;;  %v1343_v17 = vpop.f32.mrb[61].mxu0 }
 0x2bd   :  { %v830_v18 = vpop.f32.mrb[62].mxu0 }
 0x2be   :  { %v948_v58 = vadd.f32 %v828_v14, %v1784_v11  ;;  %v831_v25 = vadd.f32 %v2032_v2, %v830_v18  ;;  %v1344_v9 = vpop.f32.mrb[63].mxu0 }
 0x2c0   :  { %986 = vst [vmem:[%s2231_s7 + $0x50] sm:$0xff] %v948_v58  ;;  %v949_v59 = vadd.f32 %v831_v25, %v1787_v13 }
 0x2c2   :  { %987 = vst [vmem:[%s2231_s7 + $0x58] sm:$0xff] %v949_v59 }
 0x2c3   :  { %v835_v27 = vpop.f32.mrb[64].mxu0 }
 0x2c4   :  { %v836_v36 = vadd.f32 %v2032_v2, %v835_v27  ;;  %v1347_v10 = vpop.f32.mrb[65].mxu0 }
 0x2c5   :  { %v838_v12 = vpop.f32.mrb[66].mxu0 }
 0x2c6   :  { %v950_v11 = vadd.f32 %v836_v36, %v1802_v29  ;;  %v839_v23 = vadd.f32 %v2032_v2, %v838_v12  ;;  %v1348_v35 = vpop.f32.mrb[67].mxu0 }
 0x2c8   :  { %988 = vst [vmem:[%s2231_s7 + $0x60] sm:$0xff] %v950_v11  ;;  %v951_v13 = vadd.f32 %v839_v23, %v1805_v30 }
 0x2ca   :  { %989 = vst [vmem:[%s2231_s7 + $0x68] sm:$0xff] %v951_v13 }
 0x2cb   :  { %v843_v48 = vpop.f32.mrb[68].mxu0 }
 0x2cc   :  { %v844_v20 = vadd.f32 %v2032_v2, %v843_v48  ;;  %v1351_v61 = vpop.f32.mrb[69].mxu0 }
 0x2cd   :  { %v846_v16 = vpop.f32.mrb[70].mxu0 }
 0x2ce   :  { %v952_v29 = vadd.f32 %v844_v20, %v1816_v44  ;;  %v847_v21 = vadd.f32 %v2032_v2, %v846_v16  ;;  %v1352_v34 = vpop.f32.mrb[71].mxu0 }
 0x2d0   :  { %990 = vst [vmem:[%s2231_s7 + $0x70] sm:$0xff] %v952_v29  ;;  %v953_v30 = vadd.f32 %v847_v21, %v1819_v47 }
 0x2d2   :  { %991 = vst [vmem:[%s2231_s7 + $0x78] sm:$0xff] %v953_v30 }
 0x2d3   :  { %v851_v50 = vpop.f32.mrb[72].mxu0 }
 0x2d4   :  { %v852_v56 = vadd.f32 %v2032_v2, %v851_v50  ;;  %v1355_v57 = vpop.f32.mrb[73].mxu0 }
 0x2d5   :  { %v854_v32 = vpop.f32.mrb[74].mxu0 }
 0x2d6   :  { %v954_v44 = vadd.f32 %v852_v56, %v1828_v62  ;;  %v855_v60 = vadd.f32 %v2032_v2, %v854_v32  ;;  %v1356_v3 = vpop.f32.mrb[75].mxu0 }
 0x2d8   :  { %992 = vst [vmem:[%s2231_s7 + $0x80] sm:$0xff] %v954_v44  ;;  %v955_v47 = vadd.f32 %v855_v60, %v1831_v63 }
 0x2da   :  { %993 = vst [vmem:[%s2231_s7 + $0x88] sm:$0xff] %v955_v47 }
 0x2db   :  { %v859_v33 = vpop.f32.mrb[76].mxu0 }
 0x2dc   :  { %v860_v4 = vadd.f32 %v2032_v2, %v859_v33  ;;  %v1359_v6 = vpop.f32.mrb[77].mxu0 }
 0x2dd   :  { %v862_v5 = vpop.f32.mrb[78].mxu0 }
 0x2de   :  { %v956_v62 = vadd.f32 %v860_v4, %v1838_v22  ;;  %v863_v7 = vadd.f32 %v2032_v2, %v862_v5  ;;  %v1360_v45 = vpop.f32.mrb[79].mxu0 }
 0x2e0   :  { %994 = vst [vmem:[%s2231_s7 + $0x90] sm:$0xff] %v956_v62  ;;  %v957_v63 = vadd.f32 %v863_v7, %v1841_v24 }
 0x2e2   :  { %995 = vst [vmem:[%s2231_s7 + $0x98] sm:$0xff] %v957_v63 }
 0x2e3   :  { %v867_v0 = vpop.f32.mrb[80].mxu0 }
 0x2e4   :  { %v868_v54 = vadd.f32 %v2032_v2, %v867_v0  ;;  %v1363_v46 = vpop.f32.mrb[81].mxu0 }
 0x2e5   :  { %v870_v8 = vpop.f32.mrb[82].mxu0 }
 0x2e6   :  { %v958_v22 = vadd.f32 %v868_v54, %v1849_v28  ;;  %v871_v14 = vadd.f32 %v2032_v2, %v870_v8  ;;  %v1364_v17 = vpop.f32.mrb[83].mxu0 }
 0x2e8   :  { %996 = vst [vmem:[%s2231_s7 + $0xa0] sm:$0xff] %v958_v22  ;;  %v959_v24 = vadd.f32 %v871_v14, %v1853_v31 }
 0x2ea   :  { %997 = vst [vmem:[%s2231_s7 + $0xa8] sm:$0xff] %v959_v24 }
 0x2eb   :  { %v875_v18 = vpop.f32.mrb[84].mxu0 }
 0x2ec   :  { %v876_v58 = vadd.f32 %v2032_v2, %v875_v18  ;;  %v1367_v25 = vpop.f32.mrb[85].mxu0 }
 0x2ed   :  { %v878_v9 = vpop.f32.mrb[86].mxu0 }
 0x2ee   :  { %v960_v28 = vadd.f32 %v876_v58, %v1861_v37  ;;  %v879_v59 = vadd.f32 %v2032_v2, %v878_v9  ;;  %v1368_v27 = vpop.f32.mrb[87].mxu0 }
 0x2f0   :  { %998 = vst [vmem:[%s2231_s7 + $0xb0] sm:$0xff] %v960_v28  ;;  %v961_v31 = vadd.f32 %v879_v59, %v1865_v40 }
 0x2f2   :  { %999 = vst [vmem:[%s2231_s7 + $0xb8] sm:$0xff] %v961_v31 }
 0x2f3   :  { %v883_v36 = vpop.f32.mrb[88].mxu0 }
 0x2f4   :  { %v884_v10 = vadd.f32 %v2032_v2, %v883_v36  ;;  %v1371_v12 = vpop.f32.mrb[89].mxu0 }
 0x2f5   :  { %v886_v11 = vpop.f32.mrb[90].mxu0 }
 0x2f6   :  { %v962_v37 = vadd.f32 %v884_v10, %v1873_v15  ;;  %v887_v23 = vadd.f32 %v2032_v2, %v886_v11  ;;  %v1372_v35 = vpop.f32.mrb[91].mxu0 }
 0x2f8   :  { %1000 = vst [vmem:[%s2231_s7 + $0xc0] sm:$0xff] %v962_v37  ;;  %v963_v40 = vadd.f32 %v887_v23, %v1877_v41 }
 0x2fa   :  { %1001 = vst [vmem:[%s2231_s7 + $0xc8] sm:$0xff] %v963_v40 }
 0x2fb   :  { %v891_v13 = vpop.f32.mrb[92].mxu0 }
 0x2fc   :  { %v892_v48 = vadd.f32 %v2032_v2, %v891_v13  ;;  %v1375_v20 = vpop.f32.mrb[93].mxu0 }
 0x2fd   :  { %v894_v61 = vpop.f32.mrb[94].mxu0 }
 0x2fe   :  { %v964_v15 = vadd.f32 %v892_v48, %v1885_v26  ;;  %v895_v16 = vadd.f32 %v2032_v2, %v894_v61  ;;  %v1376_v29 = vpop.f32.mrb[95].mxu0 }
 0x300   :  { %1002 = vst [vmem:[%s2231_s7 + $0xd0] sm:$0xff] %v964_v15  ;;  %v965_v41 = vadd.f32 %v895_v16, %v1889_v42 }
 0x302   :  { %1003 = vst [vmem:[%s2231_s7 + $0xd8] sm:$0xff] %v965_v41 }
 0x303   :  { %v899_v21 = vpop.f32.mrb[96].mxu0 }
 0x304   :  { %v900_v34 = vadd.f32 %v2032_v2, %v899_v21  ;;  %v1379_v30 = vpop.f32.mrb[97].mxu0 }
 0x305   :  { %v902_v50 = vpop.f32.mrb[98].mxu0 }
 0x306   :  { %v966_v26 = vadd.f32 %v900_v34, %v1897_v38  ;;  %v903_v56 = vadd.f32 %v2032_v2, %v902_v50  ;;  %v1380_v57 = vpop.f32.mrb[99].mxu0 }
 0x308   :  { %1004 = vst [vmem:[%s2231_s7 + $0xe0] sm:$0xff] %v966_v26  ;;  %v967_v42 = vadd.f32 %v903_v56, %v1901_v43 }
 0x30a   :  { %1005 = vst [vmem:[%s2231_s7 + $0xe8] sm:$0xff] %v967_v42 }
 0x30b   :  { %v907_v32 = vpop.f32.mrb[100].mxu0 }
 0x30c   :  { %v908_v44 = vadd.f32 %v2032_v2, %v907_v32  ;;  %v1383_v60 = vpop.f32.mrb[101].mxu0 }
 0x30d   :  { %v910_v3 = vpop.f32.mrb[102].mxu0 }
 0x30e   :  { %v968_v38 = vadd.f32 %v908_v44, %v1909_v51  ;;  %v911_v47 = vadd.f32 %v2032_v2, %v910_v3  ;;  %v1384_v33 = vpop.f32.mrb[103].mxu0 }
 0x310   :  { %1006 = vst [vmem:[%s2231_s7 + $0xf0] sm:$0xff] %v968_v38  ;;  %v969_v43 = vadd.f32 %v911_v47, %v1913_v49 }
 0x312   :  { %1007 = vst [vmem:[%s2231_s7 + $0xf8] sm:$0xff] %v969_v43 }
 0x313   :  { %v915_v4 = vpop.f32.mrb[104].mxu0 }
 0x314   :  { %v916_v6 = vadd.f32 %v2032_v2, %v915_v4  ;;  %v1387_v5 = vpop.f32.mrb[105].mxu0 }
 0x315   :  { %v918_v62 = vpop.f32.mrb[106].mxu0 }
 0x316   :  { %v970_v51 = vadd.f32 %v916_v6, %v1921_v1  ;;  %v919_v7 = vadd.f32 %v2032_v2, %v918_v62  ;;  %v1388_v45 = vpop.f32.mrb[107].mxu0 }
 0x318   :  { %1008 = vst [vmem:[%s2231_s7 + $0x100] sm:$0xff] %v970_v51  ;;  %v971_v49 = vadd.f32 %v919_v7, %v1925_v52 }
 0x31a   :  { %1009 = vst [vmem:[%s2231_s7 + $0x108] sm:$0xff] %v971_v49 }
 0x31b   :  { %v923_v63 = vpop.f32.mrb[108].mxu0 }
 0x31c   :  { %v924_v0 = vadd.f32 %v2032_v2, %v923_v63  ;;  %v1391_v54 = vpop.f32.mrb[109].mxu0 }
 0x31d   :  { %v926_v46 = vpop.f32.mrb[110].mxu0 }
 0x31e   :  { %v972_v1 = vadd.f32 %v924_v0, %v1933_v19  ;;  %v927_v8 = vadd.f32 %v2032_v2, %v926_v46  ;;  %v1392_v22 = vpop.f32.mrb[111].mxu0 }
 0x320   :  { %1010 = vst [vmem:[%s2231_s7 + $0x110] sm:$0xff] %v972_v1  ;;  %v973_v52 = vadd.f32 %v927_v8, %v1936_v53 }
 0x322   :  { %1011 = vst [vmem:[%s2231_s7 + $0x118] sm:$0xff] %v973_v52 }
 0x323   :  { %v931_v14 = vpop.f32.mrb[112].mxu0 }
 0x324   :  { %v932_v17 = vadd.f32 %v2032_v2, %v931_v14  ;;  %v1395_v24 = vpop.f32.mrb[113].mxu0 }
 0x325   :  { %v934_v18 = vpop.f32.mrb[114].mxu0 }
 0x326   :  { %v974_v19 = vadd.f32 %v932_v17, %v1943_v39  ;;  %v935_v58 = vadd.f32 %v2032_v2, %v934_v18  ;;  %v1396_v25 = vpop.f32.mrb[115].mxu0 }
 0x328   :  { %1012 = vst [vmem:[%s2231_s7 + $0x120] sm:$0xff] %v974_v19  ;;  %v975_v53 = vadd.f32 %v935_v58, %v1946_v55 }
 0x32a   :  { %1013 = vst [vmem:[%s2231_s7 + $0x128] sm:$0xff] %v975_v53 }

</bundles_post_ra>
